<compile_context>
chip_gen: v5e
topology: v5e:2x2
jax: 0.10.0
libtpu: 0.0.40
codegen_flags: <defaults>
</compile_context>

<pallas_src>
import functools

import jax
import jax.numpy as jnp
from jax import lax
from jax.experimental import pallas as pl
from jax.experimental.pallas import tpu as pltpu


def _round_up(x, m):
    return ((x + m - 1) // m) * m


def _focal_loss_kernel(logits_ref, targets_ref, per_sample_ref, *, alpha, gamma):
    """One batch tile: logits [TB, C] (native dtype), targets [TB, 1] int32
    -> per-sample loss [TB, 1] f32."""
    x = logits_ref[...]                               # native dtype, only full-tile load
    t = targets_ref[...]                              # [TB, 1] int32
    tb, c = x.shape

    # Pass 1 (VPU/XLU, native dtype): row max — exact in bf16/f32.
    m = jnp.max(x, axis=1, keepdims=True).astype(jnp.float32)              # [TB, 1]

    # Pass 2 (VPU/XLU, native dtype): target-class logit via lane-iota select.
    # Exactly one nonzero per row -> the sum is exact even in bf16.
    col = lax.broadcasted_iota(jnp.int32, (tb, c), 1)
    zero = jnp.zeros((), dtype=x.dtype)
    x_t = jnp.sum(jnp.where(col == t, x, zero), axis=1,
                  keepdims=True).astype(jnp.float32)                        # [TB, 1]

    # Pass 3 (EUP): the ONLY full-tile transcendental. The upcast + shift feed
    # straight into exp — no standalone reused f32 `shifted` tile.
    sum_exp = jnp.sum(jnp.exp(x.astype(jnp.float32) - m), axis=1, keepdims=True)
    lse = jnp.log(sum_exp)                                                   # [TB, 1]

    # Tiny [TB, 1]-column epilogue.
    logpt = (x_t - m) - lse                           # log p_target
    pt = jnp.exp(logpt)
    one_minus_pt = 1.0 - pt

    g = float(gamma)
    if g == 2.0:                                      # default: single VPU multiply
        focal = one_minus_pt * one_minus_pt
    elif g == 1.0:
        focal = one_minus_pt
    elif g == 0.0:
        focal = jnp.ones_like(one_minus_pt)
    else:                                             # generic gamma (EUP, column only)
        focal = jnp.power(one_minus_pt, g)

    per_sample_ref[...] = ((-alpha) * focal * logpt).astype(per_sample_ref.dtype)


def _pick_vmem_limit():
    """Scoped-VMEM limit: 32 MiB is safe everywhere (v7x has 64 MiB physical);
    raise to 64 MiB on chips with >=128 MiB physical VMEM (v5e/v6e)."""
    limit = 32 * 1024 * 1024
    try:
        info = pltpu.get_tpu_info()
        phys = getattr(info, "vmem_capacity_bytes", None)
        if phys is not None and int(phys) >= 128 * 1024 * 1024:
            limit = 64 * 1024 * 1024
    except Exception:
        pass
    return limit


def _pick_batch_tile(B, C, itemsize, vmem_limit):
    """Batch-tile rows, a multiple of the sublane packing granularity."""
    # Sublane granularity depends on packing (f32: 8, bf16: 16, int8/fp8: 32).
    sub = max(8, 32 // max(1, itemsize))

    # Budget ~75% of the scoped limit; leave headroom for Mosaic scratch.
    budget = (vmem_limit * 3) // 4

    # Per-row in-kernel footprint:
    #   2x double-buffered native-dtype logits block           : 2*C*itemsize
    #   masked-select temp (native dtype)                      :   C*itemsize
    #   live full-tile f32 temporaries (upcast/exp)            : 2*C*4
    #   lane-padded [TB,1] buffers (targets/out DMA + columns) : ~10 * 512 B
    row_bytes = 3 * C * itemsize + 8 * C + 10 * 512
    tb = max(sub, (budget // row_bytes) // sub * sub)

    # Never bigger than the (sublane-rounded) batch.
    b_ceil = _round_up(B, sub)
    tb = min(tb, b_ceil)

    # Guarantee >= 2 grid steps whenever possible: v7x megacore sharding of the
    # "parallel" batch axis + cross-step DMA/compute overlap on v5e/v6e.
    if B > sub:
        half = -(-B // 2)                             # ceil(B / 2)
        tb = min(tb, max(sub, _round_up(half, sub)))
    return tb


def focal_loss(inputs, targets, *, alpha=1.0, gamma=2.0, reduction="mean"):
    """Pallas TPU focal loss forward.

    inputs:  [B, C] logits (any float dtype; DMA'd in native dtype)
    targets: [B]    integer class labels in [0, C)
    """
    B, C = inputs.shape
    itemsize = jnp.dtype(inputs.dtype).itemsize

    vmem_limit = _pick_vmem_limit()
    tb = _pick_batch_tile(B, C, itemsize, vmem_limit)
    grid = (pl.cdiv(B, tb),)

    t = targets.astype(jnp.int32).reshape(B, 1)

    cost = pl.CostEstimate(
        flops=int(6 * B * C + 10 * B),
        transcendentals=int(B * C + 3 * B),
        bytes_accessed=int(B * C * itemsize + B * 4 + B * 4),
    )

    kernel = functools.partial(
        _focal_loss_kernel, alpha=float(alpha), gamma=float(gamma))

    per_sample = pl.pallas_call(
        kernel,
        out_shape=jax.ShapeDtypeStruct((B, 1), jnp.float32),
        grid=grid,
        in_specs=[
            pl.BlockSpec((tb, C), lambda i: (i, 0)),   # logits tile (native dtype)
            pl.BlockSpec((tb, 1), lambda i: (i, 0)),   # target column
        ],
        out_specs=pl.BlockSpec((tb, 1), lambda i: (i, 0)),
        compiler_params=pltpu.CompilerParams(
            dimension_semantics=("parallel",),         # megacore-shardable on v7x
            vmem_limit_bytes=int(vmem_limit),
        ),
        cost_estimate=cost,
    )(inputs, t)

    per_sample = per_sample[:, 0]
    if reduction == "mean":
        return jnp.mean(per_sample)
    if reduction == "sum":
        return jnp.sum(per_sample)
    return per_sample


def _focal_loss_ref(inputs, targets, *, alpha=1.0, gamma=2.0, reduction="mean"):
    """Pure-JAX reference mirroring the PyTorch module."""
    log_probs = jax.nn.log_softmax(inputs.astype(jnp.float32), axis=1)
    probs = jnp.exp(log_probs)
    one_hot = jax.nn.one_hot(targets, inputs.shape[1], dtype=jnp.float32)
    focal_weight = (1.0 - probs) ** gamma * one_hot
    loss = -alpha * focal_weight * log_probs
    loss = loss.sum(axis=1)
    if reduction == "mean":
        return loss.mean()
    if reduction == "sum":
        return loss.sum()
    return loss


if __name__ == "__main__":
    key = jax.random.PRNGKey(0)

    # 1) Small f32 case: mean / sum / none + generic gamma.
    B, C = 8, 16
    k1, k2 = jax.random.split(key)
    logits = jax.random.normal(k1, (B, C), dtype=jnp.float32) * 2.0
    targets = jax.random.randint(k2, (B,), 0, C, dtype=jnp.int32)

    out = jax.block_until_ready(focal_loss(logits, targets, alpha=1.0, gamma=2.0))
    ref = _focal_loss_ref(logits, targets, alpha=1.0, gamma=2.0)
    assert jnp.allclose(out, ref, atol=1e-5, rtol=1e-5), (out, ref)

    out_sum = jax.block_until_ready(
        focal_loss(logits, targets, reduction="sum"))
    ref_sum = _focal_loss_ref(logits, targets, reduction="sum")
    assert jnp.allclose(out_sum, ref_sum, atol=1e-5, rtol=1e-5), (out_sum, ref_sum)

    out_none = jax.block_until_ready(
        focal_loss(logits, targets, reduction="none"))
    ref_none = _focal_loss_ref(logits, targets, reduction="none")
    assert jnp.allclose(out_none, ref_none, atol=1e-5, rtol=1e-5)

    out_g = jax.block_until_ready(
        focal_loss(logits, targets, alpha=0.25, gamma=1.5, reduction="none"))
    ref_g = _focal_loss_ref(logits, targets, alpha=0.25, gamma=1.5, reduction="none")
    assert jnp.allclose(out_g, ref_g, atol=1e-5, rtol=1e-5)

    # 2) bf16 logits, B not a sublane multiple (boundary-block path, native-dtype DMA).
    B2 = 13
    k3, k4 = jax.random.split(k2)
    logits_bf16 = (jax.random.normal(k3, (B2, C), dtype=jnp.float32) * 2.0
                   ).astype(jnp.bfloat16)
    targets2 = jax.random.randint(k4, (B2,), 0, C, dtype=jnp.int32)
    out2 = jax.block_until_ready(focal_loss(logits_bf16, targets2))
    ref2 = _focal_loss_ref(logits_bf16.astype(jnp.float32), targets2)
    assert jnp.allclose(out2, ref2, atol=1e-3, rtol=1e-3), (out2, ref2)

    # 3) Larger batch exercising the >=2-step "parallel" grid.
    B3, C3 = 64, 32
    k5, k6 = jax.random.split(k4)
    logits3 = jax.random.normal(k5, (B3, C3), dtype=jnp.float32)
    targets3 = jax.random.randint(k6, (B3,), 0, C3, dtype=jnp.int32)
    out3 = jax.block_until_ready(focal_loss(logits3, targets3))
    ref3 = _focal_loss_ref(logits3, targets3)
    assert jnp.allclose(out3, ref3, atol=1e-5, rtol=1e-5), (out3, ref3)

    print("KERNEL_OK")
</pallas_src>

<mosaic_0001>
module attributes {stable_mosaic.version = 11 : i64} {
  func.func @_focal_loss_kernel(%arg0: i32, %arg1: memref<8x16xf32, #tpu.memory_space<vmem>>, %arg2: memref<8x1xi32, #tpu.memory_space<vmem>>, %arg3: memref<8x1xf32, #tpu.memory_space<vmem>>) attributes {dimension_semantics = [#tpu.dimension_semantics<parallel>], iteration_bounds = array<i64: 1>, scalar_prefetch = 0 : i64, scratch_operands = 0 : i64, tpu.core_type = #tpu.core_type<tc>, window_params = [{transform_indices = @transform_0, window_bounds = array<i64: 8, 16>}, {transform_indices = @transform_1, window_bounds = array<i64: 8, 1>}, {transform_indices = @transform_2, window_bounds = array<i64: 8, 1>}]} {
    %c0 = arith.constant 0 : index
    %c0_0 = arith.constant 0 : index
    %0 = vector.load %arg1[%c0, %c0_0] : memref<8x16xf32, #tpu.memory_space<vmem>>, vector<8x16xf32>
    %c0_1 = arith.constant 0 : index
    %c0_2 = arith.constant 0 : index
    %1 = vector.load %arg2[%c0_1, %c0_2] : memref<8x1xi32, #tpu.memory_space<vmem>>, vector<8x1xi32>
    %cst = arith.constant dense<0xFF800000> : vector<8xf32>
    %2 = vector.multi_reduction <maximumf>, %0, %cst [1] : vector<8x16xf32> to vector<8xf32>
    %3 = vector.shape_cast %2 : vector<8xf32> to vector<8x1xf32>
    %4 = tpu.iota {dimensions = array<i32: 1>} : vector<8x16xi32>
    %5 = vector.broadcast %1 : vector<8x1xi32> to vector<8x16xi32>
    %6 = arith.cmpi eq, %4, %5 : vector<8x16xi32>
    %cst_3 = arith.constant 0.000000e+00 : f32
    %7 = vector.broadcast %cst_3 : f32 to vector<8x16xf32>
    %8 = arith.select %6, %0, %7 : vector<8x16xi1>, vector<8x16xf32>
    %cst_4 = arith.constant dense<0.000000e+00> : vector<8xf32>
    %9 = vector.multi_reduction <add>, %8, %cst_4 [1] : vector<8x16xf32> to vector<8xf32>
    %10 = vector.shape_cast %9 : vector<8xf32> to vector<8x1xf32>
    %11 = vector.broadcast %3 : vector<8x1xf32> to vector<8x16xf32>
    %12 = arith.subf %0, %11 : vector<8x16xf32>
    %13 = math.exp %12 : vector<8x16xf32>
    %cst_5 = arith.constant dense<0.000000e+00> : vector<8xf32>
    %14 = vector.multi_reduction <add>, %13, %cst_5 [1] : vector<8x16xf32> to vector<8xf32>
    %15 = vector.shape_cast %14 : vector<8xf32> to vector<8x1xf32>
    %16 = math.log %15 : vector<8x1xf32>
    %17 = arith.subf %10, %3 : vector<8x1xf32>
    %18 = arith.subf %17, %16 : vector<8x1xf32>
    %19 = math.exp %18 : vector<8x1xf32>
    %cst_6 = arith.constant 1.000000e+00 : f32
    %20 = vector.broadcast %cst_6 : f32 to vector<8x1xf32>
    %21 = arith.subf %20, %19 : vector<8x1xf32>
    %22 = arith.mulf %21, %21 : vector<8x1xf32>
    %cst_7 = arith.constant -1.000000e+00 : f32
    %23 = vector.broadcast %cst_7 : f32 to vector<8x1xf32>
    %24 = arith.mulf %23, %22 : vector<8x1xf32>
    %25 = arith.mulf %24, %18 : vector<8x1xf32>
    %c0_8 = arith.constant 0 : index
    %c0_9 = arith.constant 0 : index
    %26 = vector.load %arg3[%c0_8, %c0_9] : memref<8x1xf32, #tpu.memory_space<vmem>>, vector<8x1xf32>
    tpu.vector_store %arg3[%c0_8, %c0_9], %25 {strides = array<i32>} : memref<8x1xf32, #tpu.memory_space<vmem>>, vector<8x1xf32>,
    return
  }
  func.func @transform_0(%arg0: i32) -> (i32, i32) {
    %c0_i32 = arith.constant 0 : i32
    %c0_i32_0 = arith.constant 0 : i32
    return %arg0, %c0_i32 : i32, i32
  }
  func.func @transform_1(%arg0: i32) -> (i32, i32) {
    %c0_i32 = arith.constant 0 : i32
    %c0_i32_0 = arith.constant 0 : i32
    return %arg0, %c0_i32 : i32, i32
  }
  func.func @transform_2(%arg0: i32) -> (i32, i32) {
    %c0_i32 = arith.constant 0 : i32
    %c0_i32_0 = arith.constant 0 : i32
    return %arg0, %c0_i32 : i32, i32
  }
}

</mosaic_0001>

<bundles_post_ra>
// kernel: tpu_custom_call.1
= control target key start
LH: loop header
LB: loop body
LE: loop exit
PB: predicated region body
PF: predicated region fallthrough
CT: control target
= control target key end

     0   :  { %vm13_vm0 = vcmask 130048   ;;  %v57_v1 = vmov 0   ;;  %v17_v9 = vlaneseq  ;;  %vm43_vm2 = vcmask 7168   ;;  %s85_s0 = inlined_call_operand.vmem [shape: f32[8,16], index: 0, kind: input, shape index: {}]   ;;  %s86_s1 = inlined_call_operand.vmem [shape: s32[8,1], index: 1, kind: input, shape index: {}]   ;;  %s87_s2 = inlined_call_operand.vmem [shape: f32[8,1], index: 2, kind: output, shape index: {}]  }
   0x1   :  { %v11_v0 = vld [vmem:[%s85_s0] sm:$0xff]  ;;  %50 = vset.pattern.permute.xlu0 %v57_v1 }
   0x2   :  { %v14_v2 = vsel %vm13_vm0, %v11_v0, -inf  ;;  %v12_v3 = vld [vmem:[%s86_s1] sm:$0xff]  ;;  %v18_v10 = vand.u32 127, %v17_v9 }
   0x3   :  { %15 = vmax.xlane.f32.xlu0 %v14_v2 }
  0x17   :  { %20 = vperm.xlu0 %50, %v12_v3  }
  0x76   :  { %v16_v4 = vpop.xlane.xlu0 %15 }
  0x77   :  { %v27_v5 = vsub.f32 %v11_v0, %v16_v4 }
  0x79   :  { %v28_v6 = vmul.f32 1.442695, %v27_v5 }
  0x7b   :  { %51 = vpow2.f32 %v28_v6 }
  0x81   :  { %v52_v7 = vpop.eup %51 }
  0x82   :  { %v30_v8 = vsel %vm13_vm0, %v52_v7, 0.0 }
  0x83   :  { %31 = vadd.xlane.f32.xlu1 %v30_v8 }
  0x89   :  { %v21_v11 = vpop.permute.xlu0 %20 }
  0x8a   :  { %vm22_vm1 = vcmp.eq.s32.totalorder %v18_v10, %v21_v11 }
  0x8b   :  { %v23_v12 = vsel %vm22_vm1, %v11_v0, 0.0 }
  0x8c   :  { %v24_v13 = vsel %vm13_vm0, %v23_v12, 0.0 }
  0x8d   :  { %25 = vadd.xlane.f32.xlu1 %v24_v13 }
  0xf6   :  { %v32_v14 = vpop.xlane.xlu1 %31 }
  0xf7   :  { %53 = vlog2.f32 %v32_v14 }
  0xfd   :  { %v54_v15 = vpop.eup %53 }
  0xfe   :  { %v34_v17 = vmul.f32 0.6931472, %v54_v15 }
 0x100   :  { %v26_v16 = vpop.xlane.xlu1 %25 }
 0x101   :  { %v35_v18 = vsub.f32 %v26_v16, %v16_v4 }
 0x103   :  { %v36_v19 = vsub.f32 %v35_v18, %v34_v17 }
 0x105   :  { %v37_v20 = vmul.f32 1.442695, %v36_v19 }
 0x107   :  { %55 = vpow2.f32 %v37_v20 }
 0x10d   :  { %v56_v21 = vpop.eup %55 }
 0x10e   :  { %v39_v22 = vsub.f32 1.0, %v56_v21 }
 0x110   :  { %v40_v23 = vmul.f32 %v39_v22, %v39_v22 }
 0x112   :  { %v41_v24 = vmul.f32 -1.0, %v40_v23 }
 0x114   :  { %v42_v25 = vmul.f32 %v41_v24, %v36_v19 }
 0x116   :  { %44 = vst.msk [vmem:[%s87_s2] sm:$0xff] %vm43_vm2, %v42_v25 }

</bundles_post_ra>
